<compile_context>
chip_gen: v7x
topology: tpu7x:2x2x1
jax: 0.10.0
libtpu: 0.0.40
codegen_flags: <defaults>
</compile_context>

<pallas_src>
import jax
import jax.numpy as jnp
from jax.experimental import pallas as pl
from jax.experimental.pallas import tpu as pltpu


# --------------------------------------------------------------------------- #
# Helpers
# --------------------------------------------------------------------------- #
def _vmem_budget_bytes() -> int:
    """Per-core VMEM budget with headroom (96 MiB on v5e/v6e, 48 MiB on v7x)."""
    try:
        cap = int(pltpu.get_tpu_info().vmem_capacity_bytes)
    except Exception:
        cap = 64 << 20  # conservative: v7x per-TC VMEM
    return (cap * 3) // 4


def _vmem_limit(budget: int) -> int:
    return int(min(max(budget, 32 << 20), 100 << 20))


# --------------------------------------------------------------------------- #
# Single-pass fused path: pool + MLP + gate in one kernel (x streamed once)
# --------------------------------------------------------------------------- #
def _fused_kernel(hw: int):
    inv_hw = 1.0 / float(hw)

    def kernel(x_ref, w1_ref, b1_ref, w2_ref, b2_ref, o_ref):
        x = x_ref[...]                                        # (Bt, C, HW)
        bt = x.shape[0]

        # Global pools over the (exact, unpadded) spatial axis.
        avg_pool = jnp.sum(x, axis=-1) * inv_hw               # (Bt, C)
        max_pool = jnp.max(x, axis=-1)                        # (Bt, C)

        # Fused MLP: one matmul pair for both pool types.
        pools = jnp.concatenate([avg_pool, max_pool], axis=0)  # (2Bt, C)
        h = jnp.dot(pools, w1_ref[...],
                    preferred_element_type=jnp.float32) + b1_ref[...]
        h = jnp.maximum(h, 0.0)                                 # ReLU
        att = jnp.dot(h, w2_ref[...],
                      preferred_element_type=jnp.float32) + b2_ref[...]

        scale = jax.nn.sigmoid(att[:bt] + att[bt:])             # (Bt, C)
        o_ref[...] = (x * scale[:, :, None]).astype(o_ref.dtype)

    return kernel


def _channel_gate_fused(x_flat, w1, b1_2d, w2, b2_2d, budget, out_dtype,
                        donate_input):
    B, C, HW = x_flat.shape
    Cr = w1.shape[1]
    esz = x_flat.dtype.itemsize
    row_bytes = C * HW * esz
    weight_bytes = (w1.size + w2.size + b1_2d.size + b2_2d.size) * 4

    # Pick Bt so one slab is a few MiB (double-buffered in + out = 4 slabs),
    # but keep grid >= 2 so both v7x TensorCores get work.
    target_slab = max(row_bytes, min(8 << 20, (budget - weight_bytes) // 4))
    bt = max(1, min(B, target_slab // row_bytes))
    if B >= 2:
        bt = min(bt, max(1, B // 2))
    grid = (pl.cdiv(B, bt),)

    cost = pl.CostEstimate(
        flops=int(B * (3 * C * HW + 8 * C * Cr + 4 * C + 4 * Cr)),
        transcendentals=int(B * C),
        bytes_accessed=int(2 * B * C * HW * esz + weight_bytes),
    )

    kwargs = {}
    if donate_input:
        kwargs["input_output_aliases"] = {0: 0}

    return pl.pallas_call(
        _fused_kernel(HW),
        out_shape=jax.ShapeDtypeStruct((B, C, HW), out_dtype),
        grid=grid,
        in_specs=[
            pl.BlockSpec((bt, C, HW), lambda b: (b, 0, 0)),  # x: Bt batch rows
            pl.BlockSpec((C, Cr), lambda b: (0, 0)),         # w1 (resident)
            pl.BlockSpec((1, Cr), lambda b: (0, 0)),         # b1 (resident)
            pl.BlockSpec((Cr, C), lambda b: (0, 0)),         # w2 (resident)
            pl.BlockSpec((1, C), lambda b: (0, 0)),          # b2 (resident)
        ],
        out_specs=pl.BlockSpec((bt, C, HW), lambda b: (b, 0, 0)),
        compiler_params=pltpu.CompilerParams(
            dimension_semantics=("parallel",),
            vmem_limit_bytes=_vmem_limit(budget),
        ),
        cost_estimate=cost,
        **kwargs,
    )(x_flat, w1, b1_2d, w2, b2_2d)


# --------------------------------------------------------------------------- #
# Two-pass fallback for very large C*HW (single batch row does not fit VMEM):
#   pass 1: HW-tiled pooling kernel with accumulator outputs
#   middle: tiny MLP + sigmoid in plain JAX
#   pass 2: HW-tiled gating kernel with the precomputed (B, C, 1) scale
# --------------------------------------------------------------------------- #
def _pool_kernel(hw: int, thw: int):
    needs_mask = (hw % thw) != 0

    def kernel(x_ref, sum_ref, max_ref):
        h = pl.program_id(1)

        @pl.when(h == 0)
        def _():
            sum_ref[...] = jnp.zeros_like(sum_ref)
            max_ref[...] = jnp.full_like(max_ref, -jnp.inf)

        x = x_ref[...].astype(jnp.float32)                     # (1, C, thw)
        if needs_mask:
            # Only the tail tile has out-of-bounds lanes; mask is per-tile.
            lane = jax.lax.broadcasted_iota(jnp.int32, x.shape, dimension=2)
            valid = lane < (hw - h * thw)
            x_sum = jnp.where(valid, x, 0.0)
            x_max = jnp.where(valid, x, -jnp.inf)
        else:
            x_sum, x_max = x, x

        sum_ref[...] += jnp.sum(x_sum, axis=-1, keepdims=True)
        max_ref[...] = jnp.maximum(max_ref[...],
                                   jnp.max(x_max, axis=-1, keepdims=True))

    return kernel


def _gate_kernel(x_ref, s_ref, o_ref):
    o_ref[...] = (x_ref[...] * s_ref[...]).astype(o_ref.dtype)


def _channel_gate_two_pass(x_flat, w1, b1, w2, b2, budget, out_dtype):
    B, C, HW = x_flat.shape
    esz = x_flat.dtype.itemsize

    # HW tile: multiple of 128, roughly budget/8 bytes per x tile.
    max_lanes = max(128, (budget // 8) // max(1, C * esz))
    thw = 128 * max(1, min(pl.cdiv(HW, 128), max_lanes // 128))
    n_hw = pl.cdiv(HW, thw)
    vmem_limit = _vmem_limit(budget)

    # Pass 1: pooling (reduction axis last, accumulator outputs).
    sums, maxs = pl.pallas_call(
        _pool_kernel(HW, thw),
        out_shape=(jax.ShapeDtypeStruct((B, C, 1), jnp.float32),
                   jax.ShapeDtypeStruct((B, C, 1), jnp.float32)),
        grid=(B, n_hw),
        in_specs=[pl.BlockSpec((1, C, thw), lambda b, h: (b, 0, h))],
        out_specs=(pl.BlockSpec((1, C, 1), lambda b, h: (b, 0, 0)),
                   pl.BlockSpec((1, C, 1), lambda b, h: (b, 0, 0))),
        compiler_params=pltpu.CompilerParams(
            dimension_semantics=("parallel", "arbitrary"),
            vmem_limit_bytes=vmem_limit,
        ),
    )(x_flat)

    # Tiny MLP + sigmoid on (B, C) pooled stats: plain JAX (negligible cost).
    avg_p = sums[:, :, 0] * (1.0 / float(HW))
    max_p = maxs[:, :, 0]
    pools = jnp.concatenate([avg_p, max_p], axis=0)             # (2B, C)
    hid = jnp.maximum(pools @ w1 + b1, 0.0)
    att = hid @ w2 + b2
    scale = jax.nn.sigmoid(att[:B] + att[B:]).astype(x_flat.dtype)
    scale = scale.reshape(B, C, 1)

    # Pass 2: HW-tiled gating with the resident (1, C, 1) scale block.
    return pl.pallas_call(
        _gate_kernel,
        out_shape=jax.ShapeDtypeStruct((B, C, HW), out_dtype),
        grid=(B, n_hw),
        in_specs=[pl.BlockSpec((1, C, thw), lambda b, h: (b, 0, h)),
                  pl.BlockSpec((1, C, 1), lambda b, h: (b, 0, 0))],
        out_specs=pl.BlockSpec((1, C, thw), lambda b, h: (b, 0, h)),
        compiler_params=pltpu.CompilerParams(
            dimension_semantics=("parallel", "parallel"),
            vmem_limit_bytes=vmem_limit,
        ),
    )(x_flat, scale)


# --------------------------------------------------------------------------- #
# Public wrapper
# --------------------------------------------------------------------------- #
def channel_gate(x_nchw, w1, b1, w2, b2, *, out_dtype=None, donate_input=False,
                 max_vmem_bytes=None):
    """ChannelGate forward.

    x_nchw: (B, C, H, W).  w1: (C, Cr) = pytorch W1.T, b1: (Cr,),
    w2: (Cr, C) = pytorch W2.T, b2: (C,).
    out_dtype: optionally stream the gated output in bf16 (halves write bytes
    on v6e/v7x) — default keeps the input dtype for f32 parity.
    donate_input: alias the output onto x's HBM buffer (only if caller does
    not need x afterwards and out_dtype matches x's dtype).
    """
    B, C, H, W = x_nchw.shape
    HW = H * W
    out_dtype = x_nchw.dtype if out_dtype is None else out_dtype
    x_flat = x_nchw.reshape(B, C, HW)

    budget = _vmem_budget_bytes() if max_vmem_bytes is None else int(max_vmem_bytes)
    esz = x_flat.dtype.itemsize
    weight_bytes = (w1.size + w2.size + b1.size + b2.size) * 4
    # Single-pass needs (in + out) double-buffered slabs for Bt=1 plus weights.
    single_pass_need = 4 * C * HW * esz + weight_bytes

    if single_pass_need <= budget:
        out_flat = _channel_gate_fused(
            x_flat, w1, b1.reshape(1, -1), w2, b2.reshape(1, -1), budget,
            out_dtype, donate_input and (out_dtype == x_flat.dtype))
    else:
        out_flat = _channel_gate_two_pass(x_flat, w1, b1, w2, b2, budget,
                                          out_dtype)
    return out_flat.reshape(B, C, H, W)


def channel_gate_ref(x, w1, b1, w2, b2):
    """Pure-JAX reference mirroring the PyTorch forward."""
    avg_p = jnp.mean(x, axis=(2, 3))
    max_p = jnp.max(x, axis=(2, 3))

    def mlp(p):
        h = jnp.maximum(p @ w1 + b1, 0.0)
        return h @ w2 + b2

    att = mlp(avg_p) + mlp(max_p)
    scale = jax.nn.sigmoid(att)[:, :, None, None]
    return x * scale


if __name__ == "__main__":
    # Module config: gate_chnl must be >= reduc_ratio; use C=32, reduc_ratio=4.
    B, C = 2, 32
    reduc_ratio = 4
    Cr = C // reduc_ratio

    key = jax.random.PRNGKey(0)
    kx, kx2, k1, k2, k3, k4 = jax.random.split(key, 6)

    # PyTorch Linear stores weight as (out, in); we pass transposed (in, out).
    w1 = jax.random.normal(k1, (C, Cr), dtype=jnp.float32) * 0.1
    b1 = jax.random.normal(k2, (Cr,), dtype=jnp.float32) * 0.1
    w2 = jax.random.normal(k3, (Cr, C), dtype=jnp.float32) * 0.1
    b2 = jax.random.normal(k4, (C,), dtype=jnp.float32) * 0.1

    # Test 1: lane-aligned spatial (16x16, HW=256) -- fused single-pass path.
    x = jax.random.normal(kx, (B, C, 16, 16), dtype=jnp.float32)
    out = jax.block_until_ready(channel_gate(x, w1, b1, w2, b2))
    ref = channel_gate_ref(x, w1, b1, w2, b2)
    assert jnp.allclose(out, ref, atol=1e-5, rtol=1e-5), "mismatch (16x16)"

    # Test 2: non-multiple-of-128 spatial (14x14, HW=196) -- still the fused
    # path, now with no padding, no slice and no max-mask.
    x2 = jax.random.normal(kx2, (B, C, 14, 14), dtype=jnp.float32)
    out2 = jax.block_until_ready(channel_gate(x2, w1, b1, w2, b2))
    ref2 = channel_gate_ref(x2, w1, b1, w2, b2)
    assert jnp.allclose(out2, ref2, atol=1e-5, rtol=1e-5), "mismatch (14x14)"

    # Test 3: force the two-pass fallback (tiny VMEM budget) on the same input.
    out3 = jax.block_until_ready(
        channel_gate(x2, w1, b1, w2, b2, max_vmem_bytes=64 * 1024))
    assert jnp.allclose(out3, ref2, atol=1e-5, rtol=1e-5), "mismatch (two-pass)"

    print("KERNEL_OK")
</pallas_src>

<mosaic_0001>
module attributes {stable_mosaic.version = 11 : i64} {
  func.func @kernel(%arg0: i32, %arg1: memref<1x32x256xf32, #tpu.memory_space<vmem>>, %arg2: memref<32x8xf32, #tpu.memory_space<vmem>>, %arg3: memref<1x8xf32, #tpu.memory_space<vmem>>, %arg4: memref<8x32xf32, #tpu.memory_space<vmem>>, %arg5: memref<1x32xf32, #tpu.memory_space<vmem>>, %arg6: memref<1x32x256xf32, #tpu.memory_space<vmem>>) attributes {dimension_semantics = [#tpu.dimension_semantics<parallel>], iteration_bounds = array<i64: 2>, scalar_prefetch = 0 : i64, scratch_operands = 0 : i64, tpu.core_type = #tpu.core_type<tc>, window_params = [{transform_indices = @transform_0, window_bounds = array<i64: 1, 32, 256>}, {pipeline_mode = #tpu.pipeline_mode<synchronous>, transform_indices = @transform_1, window_bounds = array<i64: 32, 8>}, {pipeline_mode = #tpu.pipeline_mode<synchronous>, transform_indices = @transform_2, window_bounds = array<i64: 1, 8>}, {pipeline_mode = #tpu.pipeline_mode<synchronous>, transform_indices = @transform_3, window_bounds = array<i64: 8, 32>}, {pipeline_mode = #tpu.pipeline_mode<synchronous>, transform_indices = @transform_4, window_bounds = array<i64: 1, 32>}, {transform_indices = @transform_5, window_bounds = array<i64: 1, 32, 256>}]} {
    %c0 = arith.constant 0 : index
    %c0_0 = arith.constant 0 : index
    %c0_1 = arith.constant 0 : index
    %0 = vector.load %arg1[%c0, %c0_0, %c0_1] : memref<1x32x256xf32, #tpu.memory_space<vmem>>, vector<1x32x256xf32>
    %cst = arith.constant dense<0.000000e+00> : vector<1x32xf32>
    %1 = vector.multi_reduction <add>, %0, %cst [2] : vector<1x32x256xf32> to vector<1x32xf32>
    %cst_2 = arith.constant 3.906250e-03 : f32
    %2 = vector.broadcast %cst_2 : f32 to vector<1x32xf32>
    %3 = arith.mulf %1, %2 : vector<1x32xf32>
    %cst_3 = arith.constant dense<0xFF800000> : vector<1x32xf32>
    %4 = vector.multi_reduction <maximumf>, %0, %cst_3 [2] : vector<1x32x256xf32> to vector<1x32xf32>
    %5 = tpu.concatenate %3, %4 in 0 : vector<1x32xf32>, vector<1x32xf32> -> vector<2x32xf32>
    %c0_4 = arith.constant 0 : index
    %c0_5 = arith.constant 0 : index
    %6 = vector.load %arg2[%c0_4, %c0_5] : memref<32x8xf32, #tpu.memory_space<vmem>>, vector<32x8xf32>
    %cst_6 = arith.constant dense<0.000000e+00> : vector<2x8xf32>
    %7 = tpu.matmul %5, %6, %cst_6 {dimension_numbers = #tpu.dot_dimension_numbers<[1], [0], [0], [1], [0, 0, 1, 1], [], []>} : vector<2x32xf32>, vector<32x8xf32>, vector<2x8xf32> -> vector<2x8xf32>
    %c0_7 = arith.constant 0 : index
    %c0_8 = arith.constant 0 : index
    %8 = vector.load %arg3[%c0_7, %c0_8] : memref<1x8xf32, #tpu.memory_space<vmem>>, vector<1x8xf32>
    %9 = vector.broadcast %8 : vector<1x8xf32> to vector<2x8xf32>
    %10 = arith.addf %7, %9 : vector<2x8xf32>
    %cst_9 = arith.constant 0.000000e+00 : f32
    %11 = vector.broadcast %cst_9 : f32 to vector<2x8xf32>
    %12 = arith.maximumf %10, %11 : vector<2x8xf32>
    %c0_10 = arith.constant 0 : index
    %c0_11 = arith.constant 0 : index
    %13 = vector.load %arg4[%c0_10, %c0_11] : memref<8x32xf32, #tpu.memory_space<vmem>>, vector<8x32xf32>
    %cst_12 = arith.constant dense<0.000000e+00> : vector<2x32xf32>
    %14 = tpu.matmul %12, %13, %cst_12 {dimension_numbers = #tpu.dot_dimension_numbers<[1], [0], [0], [1], [0, 0, 1, 1], [], []>} : vector<2x8xf32>, vector<8x32xf32>, vector<2x32xf32> -> vector<2x32xf32>
    %c0_13 = arith.constant 0 : index
    %c0_14 = arith.constant 0 : index
    %15 = vector.load %arg5[%c0_13, %c0_14] : memref<1x32xf32, #tpu.memory_space<vmem>>, vector<1x32xf32>
    %16 = vector.broadcast %15 : vector<1x32xf32> to vector<2x32xf32>
    %17 = arith.addf %14, %16 : vector<2x32xf32>
    %18 = vector.extract_strided_slice %17 {offsets = [0, 0], sizes = [1, 32], strides = [1, 1]} : vector<2x32xf32> to vector<1x32xf32>
    %19 = vector.extract_strided_slice %17 {offsets = [1, 0], sizes = [1, 32], strides = [1, 1]} : vector<2x32xf32> to vector<1x32xf32>
    %20 = arith.addf %18, %19 : vector<1x32xf32>
    %21 = arith.negf %20 : vector<1x32xf32>
    %22 = math.exp %21 : vector<1x32xf32>
    %cst_15 = arith.constant 1.000000e+00 : f32
    %23 = vector.broadcast %cst_15 : f32 to vector<1x32xf32>
    %24 = arith.addf %23, %22 : vector<1x32xf32>
    %25 = arith.divf %23, %24 : vector<1x32xf32>
    %26 = vector.shape_cast %25 : vector<1x32xf32> to vector<1x32x1xf32>
    %27 = vector.broadcast %26 : vector<1x32x1xf32> to vector<1x32x256xf32>
    %28 = arith.mulf %0, %27 : vector<1x32x256xf32>
    %c0_16 = arith.constant 0 : index
    %c0_17 = arith.constant 0 : index
    %c0_18 = arith.constant 0 : index
    %29 = vector.load %arg6[%c0_16, %c0_17, %c0_18] : memref<1x32x256xf32, #tpu.memory_space<vmem>>, vector<1x32x256xf32>
    tpu.vector_store %arg6[%c0_16, %c0_17, %c0_18], %28 {strides = array<i32>} : memref<1x32x256xf32, #tpu.memory_space<vmem>>, vector<1x32x256xf32>,
    return
  }
  func.func @transform_0(%arg0: i32) -> (i32, i32, i32) {
    %c0_i32 = arith.constant 0 : i32
    %c0_i32_0 = arith.constant 0 : i32
    %c0_i32_1 = arith.constant 0 : i32
    return %arg0, %c0_i32, %c0_i32_0 : i32, i32, i32
  }
  func.func @transform_1(%arg0: i32) -> (i32, i32) {
    %c0_i32 = arith.constant 0 : i32
    %c0_i32_0 = arith.constant 0 : i32
    %c0_i32_1 = arith.constant 0 : i32
    return %c0_i32, %c0_i32_0 : i32, i32
  }
  func.func @transform_2(%arg0: i32) -> (i32, i32) {
    %c0_i32 = arith.constant 0 : i32
    %c0_i32_0 = arith.constant 0 : i32
    %c0_i32_1 = arith.constant 0 : i32
    return %c0_i32, %c0_i32_0 : i32, i32
  }
  func.func @transform_3(%arg0: i32) -> (i32, i32) {
    %c0_i32 = arith.constant 0 : i32
    %c0_i32_0 = arith.constant 0 : i32
    %c0_i32_1 = arith.constant 0 : i32
    return %c0_i32, %c0_i32_0 : i32, i32
  }
  func.func @transform_4(%arg0: i32) -> (i32, i32) {
    %c0_i32 = arith.constant 0 : i32
    %c0_i32_0 = arith.constant 0 : i32
    %c0_i32_1 = arith.constant 0 : i32
    return %c0_i32, %c0_i32_0 : i32, i32
  }
  func.func @transform_5(%arg0: i32) -> (i32, i32, i32) {
    %c0_i32 = arith.constant 0 : i32
    %c0_i32_0 = arith.constant 0 : i32
    %c0_i32_1 = arith.constant 0 : i32
    return %arg0, %c0_i32, %c0_i32_0 : i32, i32, i32
  }
}

</mosaic_0001>

<bundles_post_ra>
// kernel: tpu_custom_call.1
= control target key start
LH: loop header
LB: loop body
LE: loop exit
PB: predicated region body
PF: predicated region fallthrough
CT: control target
= control target key end

     0   :  { %10 = vsyncpa [#allocation3], 0  ;;  %s1110_s0 = inlined_call_operand.hbm [shape: f32[2,32,256], index: 0, kind: input, shape index: {}]   ;;  %s1111_s1 = inlined_call_operand.vmem [shape: f32[32,8], index: 1, kind: input, shape index: {}]   ;;  %s1112_s2 = inlined_call_operand.vmem [shape: f32[1,8], index: 2, kind: input, shape index: {}]   ;;  %s1113_s3 = inlined_call_operand.vmem [shape: f32[8,32], index: 3, kind: input, shape index: {}]   ;;  %s1114_s4 = inlined_call_operand.vmem [shape: f32[1,32], index: 4, kind: input, shape index: {}]   ;;  %s1115_s5 = inlined_call_operand.hbm [shape: f32[2,32,256], index: 5, kind: output, shape index: {}]  }
   0x1   :  { %12 = vsyncpa [#allocation3 + $0x1], 0 }
   0x2   :  { %13 = vsyncpa [#allocation4], 0 }
   0x3   :  { %15 = vsyncpa [#allocation4 + $0x1], 0  ;;  %s881_s18 = smov 0   ;;  %s883_s19 = smov 0  }
   0x4   :  { %s885_s20 = smov 0   ;;  %s887_s21 = smov 0  }
   0x5 LB: > { %s902_s22 = sadd.s32 4294967295, %s840_s21   ;;  %s637_s23 = sadd.s32 4294967294, %s840_s21   ;;  %s840_s21 = sphi %s887_s21, %s1128_s21   ;;  %s836_s20 = sphi %s885_s20, %s1127_s20   ;;  %s832_s19 = sphi %s883_s19, %s1126_s19   ;;  %s828_s18 = sphi %s881_s18, %s1125_s18  }
   0x6   : > { %s906_s24 = sadd.s32 1, %s840_s21   ;;  %s28_s25 = sadd.s32 1, %s836_s20 }
   0x7   : > { %s25_s26 = ssub.s32 %s840_s21, %s906_s24  ;;  %p35_p0 = scmp.ne.s32.totalorder %s836_s20, %s832_s19 }
   0x8   : > { %p26_p1 = scmp.eq.s32.totalorder %s25_s26, 0  ;;  %p36_p2 = scmp.eq.s32.totalorder %s840_s21, 0 }
   0x9   : > { %p41_p3 = scmp.ne.s32.totalorder %s832_s19, %s828_s18  ;;  %p42_p4 = scmp.eq.s32.totalorder %s902_s22, 0 }
   0xa   : > { %s918_s27 = scalar_select %p26_p1, %s836_s20, %s28_s25  }
   0xb   : > { %p920_p5 = por %p36_p2, %p35_p0  ;;  %p924_p6 = por %p42_p4, %p41_p3 }
   0xc   : > { %p149_p7 = scmp.eq.s32.totalorder %s902_s22, 1  ;;  %p155_p8 = scmp.eq.s32.totalorder %s637_s23, 1 }
   0xd   : > { %p699_p10 = scmp.lt.s32.totalorder %s840_s21, 2  ;;  %s187_s7 = sand.u32 1, %s836_s20  }
   0xe   : > { %p931_p11 = por %p149_p7, %p35_p0  ;;  %p935_p12 = por %p155_p8, %p41_p3 }
   0xf   : > { %s656_s8 = sshll.u32 %s840_s21, 10  ;;  %s640_s9 = sshll.u32 %s187_s7, 6 }
  0x10   : > { %s1119_s30 = scalar_select %p931_p11, 1, 0 }
  0x11   : > { %s1120_s6 = scalar_select %p935_p12, 1, 0 }
  0x12   : > { %s944_s12 = scalar_lea.hbm %s1110_s0, %s656_s8  ;;  %s191_s13 = scalar_lea.vmem [#allocation2], %s640_s9 }
  0x13   : > { %s198_s14 = sshll.u32 %s191_s13, 4  ;;  %p948_p13 = pnand %p699_p10, %p920_p5  ;;  %s952_s14 = int_to_ptr.vmem [resolvable:$true] %s198_s14 }
  0x14   : > { %s954_s16 = scalar_lea.sflag [#allocation3], %s187_s7  ;;  %s744_s17 = scalar_lea.hbm %s944_s12, 1024 }
  0x15   : > { %p745_p0 = scmp.ne.s32.totalorder %s944_s12, %s744_s17  ;;  %p746_p1 = pneg %p948_p13 }
  0x16   : > { %s749_s26 = scalar_lea.hbm %s1110_s0, 2048  ;;  %p750_p4 = scmp.lt.u32.totalorder %s944_s12, %s1110_s0 }
  0x17   : > { %p747_p2 = pnand %p746_p1, %p745_p0  ;;  %p751_p5 = scmp.lt.u32.totalorder %s749_s26, %s744_s17 }
  0x18   : > { %p753_p8 = scmp.lt.u32.totalorder %s744_s17, %s944_s12 }
  0x19   : > { %p748_p3 = pneg %p747_p2  ;;  %p752_p7 = por %p751_p5, %p750_p4 }
  0x1b   : > { %p754_p10 = por %p753_p8, %p752_p7 }
  0x1d   : > { %p755_p9 = pnand %p754_p10, %p748_p3 }
  0x1f   : > { %758 = shalt.err (!%p755_p9)
}
  0x20   : > { %s759_s7 = scalar_lea.vmem %s952_s14, 1024  ;;  %s842_s9 = smov [#allocation2]  }
  0x21   : > { %p760_p0 = scmp.ne.s32.totalorder %s952_s14, %s759_s7  ;;  %s764_s10 = sshll.u32 %s842_s9, 4  ;;  %s765_s10 = int_to_ptr.vmem [resolvable:$false] %s764_s10 }
  0x22   : > { %s766_s11 = scalar_lea.vmem %s765_s10, 2048  ;;  %p767_p11 = scmp.lt.s32.totalorder %s952_s14, %s765_s10 }
  0x23   : > { %p762_p2 = pnand %p760_p0, %p746_p1  ;;  %p768_p4 = scmp.lt.s32.totalorder %s766_s11, %s759_s7 }
  0x25   : > { %p763_p12 = pneg %p762_p2  ;;  %p769_p5 = por %p768_p4, %p767_p11 }
  0x27   : > { %p770_p7 = pnand %p769_p5, %p763_p12 }
  0x29   : > { %773 = shalt.err (!%p770_p7)
}
  0x2a   : > { %s843_s13 = smov 256   ;;  %s844_s17 = smov 16  }
  0x2b   : > { %694 = dma.hbm_to_vmem [thread:$0]  (!%p948_p13), %s944_s12, 1024, %s952_s14, %s954_s16, %s843_s13, %s843_s13, %s844_s17  }
  0x2c   : > { %p643_p9 = scmp.ge.s32.totalorder %s840_s21, 1  ;;  %p206_p1 = scmp.lt.s32.totalorder %s840_s21, 3 }
  0x2e   : > { %p207_p3 = pnand %p643_p9, %p206_p1 }
  0x2f   : > { %s985_s23 = sand.u32 (!%p207_p3), 1, %s832_s19  }
  0x30   : > { %210 = sbr.rel (%p207_p3) target bundleno = 821 (0x335), region = 40  ;;  %s644_s25 = sshll.u32 (!%p207_p3), %s985_s23, 6 }
  0x31   : > { %s213_s26 = scalar_lea.sflag (!%p207_p3), [#allocation3], %s985_s23  ;;  %s216_s28 = scalar_lea.vmem (!%p207_p3), [#allocation2], %s644_s25 }
  0x37   : > { %819 = dma.done.wait (%p924_p6), %s213_s26, 1024  }
  0x38   : > { %821 = vsyncadd (%p924_p6), %s213_s26, 4294966272  ;;  %v995_v0 = vld [vmem:[%s216_s28 + $0x20] sm:$0xff]  ;;  %v997_v1 = vld [vmem:[%s216_s28 + $0x28] sm:$0xff]  ;;  %v845_v19 = vmov 0.0|0.0   ;;  %vm846_vm0 = vmmov 0   ;;  %v847_v23 = vmov 0.0   ;;  %v283_v24 = vlaneseq }
  0x39   : > { %v999_v2 = vld [vmem:[%s216_s28] sm:$0xff]  ;;  %v257_v3 = vadd.f32 %v997_v1, %v995_v0  ;;  %v1003_v4 = vld [vmem:[%s216_s28 + $0x8] sm:$0xff]  ;;  %v1005_v5 = vld [vmem:[%s216_s28 + $0x30] sm:$0xff]  ;;  %v273_v15 = vmax.f32 %v995_v0, %v997_v1  ;;  %681 = vmatprep.subr.bf16.mxu0 %v845_v19  ;;  %673 = vmatprep.mubr.msk.f32.mxu0 %vm846_vm0, %v847_v23  ;;  %vm294_vm1 = vcmask 130112   ;;  %vm301_vm2 = vcmask 195712   ;;  %s242_s29 = scalar_lea.vmem [#allocation5], %s644_s25 }
  0x3a   : > { %v1007_v6 = vld [vmem:[%s216_s28 + $0x38] sm:$0xff]  ;;  %v251_v7 = vadd.f32 %v1003_v4, %v999_v2  ;;  %v1011_v8 = vld [vmem:[%s216_s28 + $0x10] sm:$0xff]  ;;  %v267_v13 = vmax.f32 %v999_v2, %v1003_v4  ;;  %v337_v16 = vld [vmem:[%s1111_s1] sm:$0xff]  ;;  %676 = vmatprep.subr.mxu1 %v847_v23  ;;  %678 = vmatprep.mubr.msk.f32.mxu1 %vm846_vm0, %v847_v23  ;;  %v284_v25 = vand.u32 127, %v283_v24  ;;  %v286_v28 = vshrl.u32 %v283_v24, 7  ;;  %s564_s12 = sshll.u32 %s242_s29, 4  ;;  %s1059_s12 = int_to_ptr.vmem [resolvable:$true] %s564_s12 }
  0x3b   : > { %v1013_v9 = vld [vmem:[%s216_s28 + $0x18] sm:$0xff]  ;;  %258 = vadd.xlane.f32.xlu1 %v257_v3  ;;  %v260_v10 = vadd.f32 %v1007_v6, %v1005_v5  ;;  %v276_v14 = vmax.f32 %v1005_v5, %v1007_v6  ;;  %v338_v17 = vld [vmem:[%s1111_s1 + $0x8] sm:$0xff]  ;;  %v339_v20 = vld [vmem:[%s1111_s1 + $0x10] sm:$0xff]  ;;  %vm308_vm3 = vcmask 261312   ;;  %vm335_vm4 = vcmask 1040384   ;;  %s657_s14 = sshll.u32 %s902_s22, 10 }
  0x3c   : > { %252 = vadd.xlane.f32.xlu0 %v251_v7  ;;  %v254_v11 = vadd.f32 %v1013_v9, %v1011_v8  ;;  %v270_v12 = vmax.f32 %v1011_v8, %v1013_v9  ;;  %v682_v18 = vpack.c.bf16 %v338_v17, %v337_v16  ;;  %v340_v21 = vld [vmem:[%s1111_s1 + $0x18] sm:$0xff]  ;;  %v289_v27 = vadd.s32 4294967288, %v284_v25  ;;  %v423_v61 = vld [vmem:[%s1113_s3] sm:$0xff]  ;;  %s1064_s16 = scalar_lea.hbm %s1115_s5, %s657_s14  ;;  %s551_s22 = scalar_lea.sflag [#allocation4], %s985_s23 }
  0x3d   : > { %v685_v22 = vpack.c.bf16 %v340_v21, %v339_v20  ;;  %v296_v30 = vadd.s32 4294967280, %v284_v25  ;;  %v287_v33 = vsub.s32 %v284_v25, %v286_v28  ;;  %v303_v35 = vadd.s32 4294967272, %v284_v25  ;;  %677 = vmatpush3.msra.mxu1 %v423_v61  ;;  %v646_v62 = vld [vmem:[%s1112_s2] ss:$0 sm:$0xff]  ;;  %s774_s8 = scalar_lea.vmem %s1059_s12, 1024  ;;  %p1122_p11 = scmp.ne.s32.totalorder %s1119_s30, 0 }
  0x3e   : > { %683 = vmatpush3.bf16.msra.mxu0 %v682_v18  ;;  %v292_v32 = vsub.s32 %v289_v27, %v286_v28  ;;  %vm348_vm5 = vcmask 261120   ;;  %vm431_vm6 = vcmask 64512   ;;  %v517_v20 = vsub.s32 0, %v286_v28  ;;  %p775_p6 = scmp.ne.s32.totalorder %s1059_s12, %s774_s8  ;;  %s848_s7 = smov [#allocation5]  }
  0x3f   : > { %261 = vadd.xlane.f32.xlu1 %v260_v10  ;;  %684 = vmatprep.subr.bf16.mxu0 %v845_v19  ;;  %v299_v38 = vsub.s32 %v296_v30, %v286_v28  ;;  %v306_v43 = vsub.s32 %v303_v35, %v286_v28  ;;  %s778_s9 = sshll.u32 %s848_s7, 4  ;;  %s779_s9 = int_to_ptr.vmem [resolvable:$false] %s778_s9 }
  0x40   : > { %255 = vadd.xlane.f32.xlu0 %v254_v11  ;;  %v648_v11 = vld [vmem:[%s1114_s4] ss:$0 sm:$0xff]  ;;  %p776_p12 = pnand %p775_p6, %p1122_p11  ;;  %s780_s10 = scalar_lea.vmem %s779_s9, 2048 }
  0x41   : > { %p781_p8 = scmp.lt.s32.totalorder %s1059_s12, %s779_s9  ;;  %p782_p10 = scmp.lt.s32.totalorder %s780_s10, %s774_s8 }
  0x42   : > { %686 = vmatpush3.bf16.msra.mxu0 %v685_v22  ;;  %p777_p13 = pneg %p776_p12 }
  0x43   : > { %271 = vmax.xlane.f32.xlu1 %v270_v12  ;;  %p783_p0 = por %p782_p10, %p781_p8 }
  0x44   : > { %268 = vmax.xlane.f32.xlu0 %v267_v13 }
  0x45   : > { %p784_p2 = pnand %p783_p0, %p777_p13 }
  0x47   : > { %277 = vmax.xlane.f32.xlu1 %v276_v14 }
  0x48   : > { %274 = vmax.xlane.f32.xlu0 %v273_v15 }
  0xc8   : > { %v259_v26 = vpop.xlane.xlu1 %258 }
  0xc9   : > { %v253_v29 = vpop.xlane.xlu0 %252  ;;  %v265_v39 = vmul.f32 0.00390625, %v259_v26 }
  0xca   : > { %v263_v34 = vmul.f32 0.00390625, %v253_v29 }
  0xcb   : > { %v300_v49 = vrot.slane %v265_v39, %v299_v38 }
  0xcc   : > { %v262_v31 = vpop.xlane.xlu1 %261  ;;  %v288_v42 = vrot.slane %v263_v34, %v287_v33 }
  0xcd   : > { %v256_v36 = vpop.xlane.xlu0 %255  ;;  %v266_v44 = vmul.f32 0.00390625, %v262_v31 }
  0xce   : > { %v264_v37 = vmul.f32 0.00390625, %v256_v36 }
  0xcf   : > { %v307_v51 = vrot.slane %v266_v44, %v306_v43 }
  0xd0   : > { %v293_v40 = vrot.slane %v264_v37, %v292_v32  ;;  %v272_v41 = vpop.xlane.xlu1 %271 }
  0xd1   : > { %v269_v45 = vpop.xlane.xlu0 %268  ;;  %v322_v47 = vrot.slane %v272_v41, %v292_v32 }
  0xd2   : > { %v295_v46 = vsel %vm294_vm1, %v293_v40, %v288_v42  ;;  %v318_v48 = vrot.slane %v269_v45, %v287_v33 }
  0xd3   : > { %v302_v55 = vsel %vm301_vm2, %v300_v49, %v295_v46 }
  0xd4   : > { %v278_v50 = vpop.xlane.xlu1 %277  ;;  %v323_v56 = vsel %vm294_vm1, %v322_v47, %v318_v48  ;;  %v309_v59 = vsel %vm308_vm3, %v307_v51, %v302_v55 }
  0xd5   : > { %v275_v52 = vpop.xlane.xlu0 %274  ;;  %v332_v53 = vrot.slane %v278_v50, %v306_v43 }
  0xd6   : > { %v327_v54 = vrot.slane %v275_v52, %v299_v38 }
  0xd8   : > { %v328_v57 = vsel %vm301_vm2, %v327_v54, %v323_v56 }
  0xd9   : > { %v333_v58 = vsel %vm308_vm3, %v332_v53, %v328_v57 }
  0xda   : > { %v336_v60 = vsel %vm335_vm4, %v309_v59, %v333_v58 }
  0xdb   : > { %674 = vmatmul.mubr.msk.f32.vlgmr.msra.gmra.mrb[0].mxu0 %vm348_vm5, %v336_v60 }
 0x1ae   : > { %v418_v63 = vpop.f32.mrb[0].mxu0 }
 0x1af   : > { %v419_v3 = vadd.f32 %v646_v62, %v418_v63  ;;  %v675_v7 = vpop.f32.mrb[1].mxu0 }
 0x1b1   : > { %v422_v10 = vmax.f32 %v419_v3, 0.0 }
 0x1b3   : > { %679 = vmatmul.mubr.msk.f32.vlgmr.msra.gmra.mrb[0].mxu1 %vm431_vm6, %v422_v10 }
 0x286   : > { %v501_v12 = vpop.f32.mrb[0].mxu1 }
 0x287   : > { %v502_v13 = vadd.f32 %v648_v11, %v501_v12  ;;  %v680_v14 = vpop.f32.mrb[1].mxu1 }
 0x289   : > { %v506_v15 = vrot.slane %v502_v13, 1 }
 0x28b   : > { %v508_v16 = vadd.f32 %v506_v15, %v502_v13 }
 0x28d   : > { %v650_v17 = vmul.f32 -1.442695, %v508_v16 }
 0x28f   : > { %740 = vpow2.f32 %v650_v17 }
 0x299   : > { %v741_v18 = vpop.eup %740 }
 0x29a   : > { %v512_v19 = vadd.f32 1.0, %v741_v18 }
 0x29c   : > { %742 = vrcp.f32 %v512_v19 }
 0x2a6   : > { %v743_v21 = vpop.eup %742 }
 0x2a7   : > { %v518_v22 = vrot.slane %v743_v21, %v517_v20 }
 0x2a9   : > { %524 = vbcast.lane.b32.xlu1 %v518_v22, 264  ;;  %520 = vbcast.lane.b32.xlu0 %v518_v22, 256 }
 0x2ad   : > { %528 = vbcast.lane.b32.xlu1 %v518_v22, 272 }
 0x2b1   : > { %532 = vbcast.lane.b32.xlu1 %v518_v22, 280 }
 0x31b   : > { %v525_v23 = vpop.permute.xlu1 %524  ;;  %v521_v24 = vpop.permute.xlu0 %520 }
 0x31c   : > { %v536_v25 = vmul.f32 %v525_v23, %v1011_v8  ;;  %v537_v26 = vmul.f32 %v525_v23, %v1013_v9  ;;  %v534_v27 = vmul.f32 %v521_v24, %v999_v2  ;;  %v535_v29 = vmul.f32 %v521_v24, %v1003_v4 }
 0x31e   : > { %544 = vst [vmem:[%s242_s29 + $0x10] sm:$0xff] %v536_v25  ;;  %545 = vst [vmem:[%s242_s29 + $0x18] sm:$0xff] %v537_v26 }
 0x31f   : > { %542 = vst [vmem:[%s242_s29] sm:$0xff] %v534_v27  ;;  %543 = vst [vmem:[%s242_s29 + $0x8] sm:$0xff] %v535_v29  ;;  %v529_v28 = vpop.permute.xlu1 %528 }
 0x320   : > { %v538_v30 = vmul.f32 %v529_v28, %v995_v0  ;;  %v539_v8 = vmul.f32 %v529_v28, %v997_v1 }
 0x322   : > { %546 = vst [vmem:[%s242_s29 + $0x20] sm:$0xff] %v538_v30  ;;  %547 = vst [vmem:[%s242_s29 + $0x28] sm:$0xff] %v539_v8 }
 0x323   : > { %v533_v2 = vpop.permute.xlu1 %532 }
 0x324   : > { %v540_v4 = vmul.f32 %v533_v2, %v1005_v5  ;;  %v541_v0 = vmul.f32 %v533_v2, %v1007_v6 }
 0x326   : > { %548 = vst [vmem:[%s242_s29 + $0x30] sm:$0xff] %v540_v4  ;;  %549 = vst [vmem:[%s242_s29 + $0x38] sm:$0xff] %v541_v0 }
 0x327   : > { %787 = shalt.err (!%p784_p2)
}
 0x328   : > { %s788_s11 = scalar_lea.hbm %s1064_s16, 1024  ;;  %s792_s26 = scalar_lea.hbm %s1115_s5, 2048 }
 0x329   : > { %p789_p4 = scmp.ne.s32.totalorder %s1064_s16, %s788_s11  ;;  %p793_p9 = scmp.lt.u32.totalorder %s1064_s16, %s1115_s5 }
 0x32a   : > { %p794_p1 = scmp.lt.u32.totalorder %s792_s26, %s788_s11  ;;  %p796_p6 = scmp.lt.u32.totalorder %s788_s11, %s1064_s16 }
 0x32b   : > { %p790_p5 = pnand %p789_p4, %p1122_p11 }
 0x32c   : > { %p795_p3 = por %p794_p1, %p793_p9 }
 0x32d   : > { %p791_p7 = pneg %p790_p5 }
 0x32e   : > { %p797_p12 = por %p796_p6, %p795_p3 }
 0x330   : > { %p798_p13 = pnand %p797_p12, %p791_p7 }
 0x332   : > { %801 = shalt.err (!%p798_p13)
}
 0x333   : > { %s849_s14 = smov 256   ;;  %s850_s25 = smov 16  }
 0x334   : > { %689 = dma.vmem_to_hbm [thread:$0]  (%p1122_p11), %s1059_s12, 1024, %s1064_s16, %s551_s22, %s849_s14, %s849_s14, %s850_s25  }
 0x335 PF: > { %s579_s15 = sand.u32 1, %s828_s18   ;;  %p1123_p8 = scmp.ne.s32.totalorder %s1120_s6, 0 }
 0x336   : > { %p1124_p10 = scmp.ge.s32.totalorder %s840_s21, 2  ;;  %s580_s8 = scalar_lea.sflag [#allocation4], %s579_s15 }
 0x338   : > { %p696_p0 = pnand %p1124_p10, %p1123_p8 }
 0x33a   : > { %823 = dma.done.wait (!%p696_p0), %s580_s8, 1024  }
 0x33b   : > { %825 = vsyncadd (!%p696_p0), %s580_s8, 4294966272  ;;  %p18_p2 = scmp.ge.s32.totalorder %s906_s24, 4   ;;  %s1125_s18 = smov %s832_s19 }
 0x33c   : > { %s1126_s19 = smov %s836_s20  ;;  %s1127_s20 = smov %s918_s27 }
 0x33d   : > { %s1128_s21 = smov %s906_s24  ;;  %20 = sbr.rel (!%p18_p2) target bundleno = 5 (0x5), region = 85 }
 0x344   :  { %585 = vsyncpa [#allocation3], 1 }
 0x345   :  { %587 = vsyncpa [#allocation3 + $0x1], 1 }
 0x346   :  { %588 = vsyncpa [#allocation4], 1 }
 0x347   :  { %590 = vsyncpa [#allocation4 + $0x1], 1 }

</bundles_post_ra>
